<compile_context>
chip_gen: v6e
topology: v6e:2x2x1
jax: 0.10.0
libtpu: 0.0.40
codegen_flags: <defaults>
</compile_context>

<pallas_src>
import functools
import math

import jax
import jax.numpy as jnp
from jax import lax
from jax.experimental import pallas as pl
from jax.experimental.pallas import tpu as pltpu


def _round_up(x: int, m: int) -> int:
    return ((x + m - 1) // m) * m


def mpnet_output_kernel(
    x_ref,      # (tm, I)  hidden_states row tile (intermediate features)
    w_ref,      # (I, H)   dense weight, fully VMEM-resident
    b_ref,      # (1, H)   dense bias
    res_ref,    # (tm, H)  input_tensor row tile (residual)
    g_ref,      # (1, H)   LayerNorm gamma
    beta_ref,   # (1, H)   LayerNorm beta
    o_ref,      # (tm, H)  output row tile
    *,
    eps: float,
):
    # Dense: single MXU matmul per row tile, f32 accumulation.
    y = jnp.dot(x_ref[...], w_ref[...], preferred_element_type=jnp.float32)

    # Dense bias + residual (dropout is the identity at inference).
    y = y + b_ref[...].astype(jnp.float32) + res_ref[...].astype(jnp.float32)

    # LayerNorm over the hidden (lane) axis: mean via constant multiply,
    # normalization via EUP rsqrt — no VPU divides in the epilogue.
    inv_h = 1.0 / float(y.shape[-1])
    mean = jnp.sum(y, axis=-1, keepdims=True) * inv_h
    centered = y - mean
    var = jnp.sum(centered * centered, axis=-1, keepdims=True) * inv_h
    inv_std = lax.rsqrt(var + eps)

    out = centered * inv_std * g_ref[...].astype(jnp.float32) \
        + beta_ref[...].astype(jnp.float32)
    o_ref[...] = out.astype(o_ref.dtype)   # lane-dense full-H store


def mpnet_output(
    hidden_states,   # (B, S, I)
    input_tensor,    # (B, S, H)
    w,               # (I, H)  dense weight, pre-transposed (in, out)
    b,               # (H,)    dense bias
    gamma,           # (H,)    LayerNorm weight
    beta,            # (H,)    LayerNorm bias
    *,
    eps: float = 1e-12,
    compute_dtype=None,   # e.g. jnp.bfloat16 for the fast production path
    max_row_tile: int = 512,
):
    B, S, I = hidden_states.shape
    H = input_tensor.shape[-1]
    M = B * S
    out_dtype = input_tensor.dtype

    x2 = hidden_states.reshape(M, I)
    r2 = input_tensor.reshape(M, H)
    if compute_dtype is not None:
        x2 = x2.astype(compute_dtype)
        w = w.astype(compute_dtype)
    b2 = b.reshape(1, H)
    g2 = gamma.reshape(1, H)
    beta2 = beta.reshape(1, H)

    x_bpe = jnp.dtype(x2.dtype).itemsize
    w_bpe = jnp.dtype(w.dtype).itemsize
    r_bpe = jnp.dtype(r2.dtype).itemsize
    o_bpe = jnp.dtype(out_dtype).itemsize

    # Conservative VMEM budget: safe on v7x (64 MiB physical) and well under
    # v5e/v6e's 128 MiB; leaves headroom for the resident weight plus
    # double-buffered x / residual / output tiles.
    VMEM_BUDGET = 48 * 1024 * 1024
    w_bytes = I * H * w_bpe

    def footprint(tm: int) -> int:
        x_b = tm * I * x_bpe
        r_b = tm * H * r_bpe
        o_b = tm * H * o_bpe
        small = 3 * H * 4
        # Weight is grid-invariant (counted once); pipelined operands 2x.
        return w_bytes + 2 * (x_b + r_b + o_b) + small

    M_pad8 = _round_up(M, 8)
    tm = min(max_row_tile, M_pad8)
    tm = _round_up(tm, 8)
    while tm > 8 and footprint(tm) > VMEM_BUDGET:
        tm = max(8, _round_up(tm // 2, 8))
    # TODO(synk): for very large M on v7x, also ensure M//tm >= ~8 so both
    # TensorCores get several pipelined steps each (naturally true at tm<=512).

    # Pad rows to a multiple of the row tile (avoids the whole-M fallback).
    M_padded = _round_up(M, tm)
    if M_padded != M:
        pad = M_padded - M
        x2 = jnp.pad(x2, ((0, pad), (0, 0)))
        r2 = jnp.pad(r2, ((0, pad), (0, 0)))
    grid = (M_padded // tm,)

    # Explicit scoped-VMEM limit: defaults (16 MiB v5e / 32 MiB v6e, v7x)
    # would gate the resident-weight + large-row-tile layout.
    vmem_limit = int(min(60 * 1024 * 1024,
                         max(32 * 1024 * 1024, int(footprint(tm) * 1.5))))

    kernel = functools.partial(mpnet_output_kernel, eps=eps)

    out2 = pl.pallas_call(
        kernel,
        out_shape=jax.ShapeDtypeStruct((M_padded, H), out_dtype),
        grid_spec=pltpu.PrefetchScalarGridSpec(
            num_scalar_prefetch=0,
            grid=grid,
            in_specs=[
                pl.BlockSpec((tm, I), lambda i: (i, 0)),   # x row tile
                pl.BlockSpec((I, H), lambda i: (0, 0)),    # resident weight
                pl.BlockSpec((1, H), lambda i: (0, 0)),    # bias
                pl.BlockSpec((tm, H), lambda i: (i, 0)),   # residual row tile
                pl.BlockSpec((1, H), lambda i: (0, 0)),    # gamma
                pl.BlockSpec((1, H), lambda i: (0, 0)),    # beta
            ],
            out_specs=pl.BlockSpec((tm, H), lambda i: (i, 0)),
        ),
        compiler_params=pltpu.CompilerParams(
            dimension_semantics=("parallel",),
            vmem_limit_bytes=vmem_limit,
        ),
    )(x2, w, b2, r2, g2, beta2)

    return out2[:M].reshape(B, S, H)


def mpnet_output_ref(hidden_states, input_tensor, w, b, gamma, beta, eps=1e-12):
    y = hidden_states @ w + b
    # dropout is identity at inference
    y = y + input_tensor
    mean = jnp.mean(y, axis=-1, keepdims=True)
    var = jnp.mean((y - mean) ** 2, axis=-1, keepdims=True)
    return (y - mean) / jnp.sqrt(var + eps) * gamma + beta


if __name__ == "__main__":
    # Small shapes consistent with the module: hidden=32, intermediate=64.
    B, S, H, I = 2, 8, 32, 64
    eps = 1e-12

    key = jax.random.PRNGKey(0)
    keys = jax.random.split(key, 6)

    hidden_states = jax.random.normal(keys[0], (B, S, I), dtype=jnp.float32)
    input_tensor = jax.random.normal(keys[1], (B, S, H), dtype=jnp.float32)

    bound = 1.0 / math.sqrt(I)
    w = jax.random.uniform(keys[2], (I, H), jnp.float32, -bound, bound)
    b = jax.random.uniform(keys[3], (H,), jnp.float32, -bound, bound)
    gamma = 1.0 + 0.1 * jax.random.normal(keys[4], (H,), jnp.float32)
    beta = 0.1 * jax.random.normal(keys[5], (H,), jnp.float32)

    ref = mpnet_output_ref(hidden_states, input_tensor, w, b, gamma, beta, eps=eps)

    # f32 path: tight numerical check against the reference.
    out_f32 = mpnet_output(hidden_states, input_tensor, w, b, gamma, beta, eps=eps)
    out_f32 = jax.block_until_ready(out_f32)
    assert out_f32.shape == (B, S, H)
    assert jnp.allclose(out_f32, ref, atol=1e-4, rtol=1e-4), (
        f"f32 max abs err = {jnp.max(jnp.abs(out_f32 - ref))}"
    )

    # bf16 compute path (production setting from the perf review): bf16 x/W on
    # the MXU, f32 accumulation and f32 LayerNorm epilogue — loose tolerance.
    out_bf16 = mpnet_output(
        hidden_states, input_tensor, w, b, gamma, beta,
        eps=eps, compute_dtype=jnp.bfloat16,
    )
    out_bf16 = jax.block_until_ready(out_bf16)
    assert out_bf16.shape == (B, S, H)
    assert jnp.allclose(out_bf16, ref, atol=1e-1, rtol=1e-1), (
        f"bf16 max abs err = {jnp.max(jnp.abs(out_bf16 - ref))}"
    )

    print("KERNEL_OK")
</pallas_src>

<mosaic_0001>
module attributes {stable_mosaic.version = 11 : i64} {
  func.func @mpnet_output_kernel(%arg0: i32, %arg1: memref<16x64xf32, #tpu.memory_space<vmem>>, %arg2: memref<64x32xf32, #tpu.memory_space<vmem>>, %arg3: memref<1x32xf32, #tpu.memory_space<vmem>>, %arg4: memref<16x32xf32, #tpu.memory_space<vmem>>, %arg5: memref<1x32xf32, #tpu.memory_space<vmem>>, %arg6: memref<1x32xf32, #tpu.memory_space<vmem>>, %arg7: memref<16x32xf32, #tpu.memory_space<vmem>>) attributes {dimension_semantics = [#tpu.dimension_semantics<parallel>], iteration_bounds = array<i64: 1>, scalar_prefetch = 0 : i64, scratch_operands = 0 : i64, tpu.core_type = #tpu.core_type<tc>, window_params = [{transform_indices = @transform_0, window_bounds = array<i64: 16, 64>}, {pipeline_mode = #tpu.pipeline_mode<synchronous>, transform_indices = @transform_1, window_bounds = array<i64: 64, 32>}, {pipeline_mode = #tpu.pipeline_mode<synchronous>, transform_indices = @transform_2, window_bounds = array<i64: 1, 32>}, {transform_indices = @transform_3, window_bounds = array<i64: 16, 32>}, {pipeline_mode = #tpu.pipeline_mode<synchronous>, transform_indices = @transform_4, window_bounds = array<i64: 1, 32>}, {pipeline_mode = #tpu.pipeline_mode<synchronous>, transform_indices = @transform_5, window_bounds = array<i64: 1, 32>}, {transform_indices = @transform_6, window_bounds = array<i64: 16, 32>}]} {
    %c0 = arith.constant 0 : index
    %c0_0 = arith.constant 0 : index
    %0 = vector.load %arg1[%c0, %c0_0] : memref<16x64xf32, #tpu.memory_space<vmem>>, vector<16x64xf32>
    %c0_1 = arith.constant 0 : index
    %c0_2 = arith.constant 0 : index
    %1 = vector.load %arg2[%c0_1, %c0_2] : memref<64x32xf32, #tpu.memory_space<vmem>>, vector<64x32xf32>
    %cst = arith.constant dense<0.000000e+00> : vector<16x32xf32>
    %2 = tpu.matmul %0, %1, %cst {dimension_numbers = #tpu.dot_dimension_numbers<[1], [0], [0], [1], [0, 0, 1, 1], [], []>} : vector<16x64xf32>, vector<64x32xf32>, vector<16x32xf32> -> vector<16x32xf32>
    %c0_3 = arith.constant 0 : index
    %c0_4 = arith.constant 0 : index
    %3 = vector.load %arg3[%c0_3, %c0_4] : memref<1x32xf32, #tpu.memory_space<vmem>>, vector<1x32xf32>
    %4 = vector.broadcast %3 : vector<1x32xf32> to vector<16x32xf32>
    %5 = arith.addf %2, %4 : vector<16x32xf32>
    %c0_5 = arith.constant 0 : index
    %c0_6 = arith.constant 0 : index
    %6 = vector.load %arg4[%c0_5, %c0_6] : memref<16x32xf32, #tpu.memory_space<vmem>>, vector<16x32xf32>
    %7 = arith.addf %5, %6 : vector<16x32xf32>
    %cst_7 = arith.constant dense<0.000000e+00> : vector<16xf32>
    %8 = vector.multi_reduction <add>, %7, %cst_7 [1] : vector<16x32xf32> to vector<16xf32>
    %9 = vector.shape_cast %8 : vector<16xf32> to vector<16x1xf32>
    %cst_8 = arith.constant 3.125000e-02 : f32
    %10 = vector.broadcast %cst_8 : f32 to vector<16x1xf32>
    %11 = arith.mulf %9, %10 : vector<16x1xf32>
    %12 = vector.broadcast %11 : vector<16x1xf32> to vector<16x32xf32>
    %13 = arith.subf %7, %12 : vector<16x32xf32>
    %14 = arith.mulf %13, %13 : vector<16x32xf32>
    %cst_9 = arith.constant dense<0.000000e+00> : vector<16xf32>
    %15 = vector.multi_reduction <add>, %14, %cst_9 [1] : vector<16x32xf32> to vector<16xf32>
    %16 = vector.shape_cast %15 : vector<16xf32> to vector<16x1xf32>
    %cst_10 = arith.constant 3.125000e-02 : f32
    %17 = vector.broadcast %cst_10 : f32 to vector<16x1xf32>
    %18 = arith.mulf %16, %17 : vector<16x1xf32>
    %cst_11 = arith.constant 9.99999996E-13 : f32
    %19 = vector.broadcast %cst_11 : f32 to vector<16x1xf32>
    %20 = arith.addf %18, %19 : vector<16x1xf32>
    %21 = math.rsqrt %20 : vector<16x1xf32>
    %22 = vector.broadcast %21 : vector<16x1xf32> to vector<16x32xf32>
    %23 = arith.mulf %13, %22 : vector<16x32xf32>
    %c0_12 = arith.constant 0 : index
    %c0_13 = arith.constant 0 : index
    %24 = vector.load %arg5[%c0_12, %c0_13] : memref<1x32xf32, #tpu.memory_space<vmem>>, vector<1x32xf32>
    %25 = vector.broadcast %24 : vector<1x32xf32> to vector<16x32xf32>
    %26 = arith.mulf %23, %25 : vector<16x32xf32>
    %c0_14 = arith.constant 0 : index
    %c0_15 = arith.constant 0 : index
    %27 = vector.load %arg6[%c0_14, %c0_15] : memref<1x32xf32, #tpu.memory_space<vmem>>, vector<1x32xf32>
    %28 = vector.broadcast %27 : vector<1x32xf32> to vector<16x32xf32>
    %29 = arith.addf %26, %28 : vector<16x32xf32>
    %c0_16 = arith.constant 0 : index
    %c0_17 = arith.constant 0 : index
    %30 = vector.load %arg7[%c0_16, %c0_17] : memref<16x32xf32, #tpu.memory_space<vmem>>, vector<16x32xf32>
    tpu.vector_store %arg7[%c0_16, %c0_17], %29 {strides = array<i32>} : memref<16x32xf32, #tpu.memory_space<vmem>>, vector<16x32xf32>,
    return
  }
  func.func @transform_0(%arg0: i32) -> (i32, i32) {
    %c0_i32 = arith.constant 0 : i32
    %c0_i32_0 = arith.constant 0 : i32
    return %arg0, %c0_i32 : i32, i32
  }
  func.func @transform_1(%arg0: i32) -> (i32, i32) {
    %c0_i32 = arith.constant 0 : i32
    %c0_i32_0 = arith.constant 0 : i32
    %c0_i32_1 = arith.constant 0 : i32
    return %c0_i32, %c0_i32_0 : i32, i32
  }
  func.func @transform_2(%arg0: i32) -> (i32, i32) {
    %c0_i32 = arith.constant 0 : i32
    %c0_i32_0 = arith.constant 0 : i32
    %c0_i32_1 = arith.constant 0 : i32
    return %c0_i32, %c0_i32_0 : i32, i32
  }
  func.func @transform_3(%arg0: i32) -> (i32, i32) {
    %c0_i32 = arith.constant 0 : i32
    %c0_i32_0 = arith.constant 0 : i32
    return %arg0, %c0_i32 : i32, i32
  }
  func.func @transform_4(%arg0: i32) -> (i32, i32) {
    %c0_i32 = arith.constant 0 : i32
    %c0_i32_0 = arith.constant 0 : i32
    %c0_i32_1 = arith.constant 0 : i32
    return %c0_i32, %c0_i32_0 : i32, i32
  }
  func.func @transform_5(%arg0: i32) -> (i32, i32) {
    %c0_i32 = arith.constant 0 : i32
    %c0_i32_0 = arith.constant 0 : i32
    %c0_i32_1 = arith.constant 0 : i32
    return %c0_i32, %c0_i32_0 : i32, i32
  }
  func.func @transform_6(%arg0: i32) -> (i32, i32) {
    %c0_i32 = arith.constant 0 : i32
    %c0_i32_0 = arith.constant 0 : i32
    return %arg0, %c0_i32 : i32, i32
  }
}

</mosaic_0001>

<bundles_post_ra>
// kernel: tpu_custom_call.1
= control target key start
LH: loop header
LB: loop body
LE: loop exit
PB: predicated region body
PF: predicated region fallthrough
CT: control target
= control target key end

     0   :  { %vm41_vm0 = vcmask 523264   ;;  %s347_s0 = inlined_call_operand.vmem [shape: f32[16,64], index: 0, kind: input, shape index: {}]   ;;  %s348_s1 = inlined_call_operand.vmem [shape: f32[64,32], index: 1, kind: input, shape index: {}]   ;;  %s349_s2 = inlined_call_operand.vmem [shape: f32[1,32], index: 2, kind: input, shape index: {}]   ;;  %s350_s3 = inlined_call_operand.vmem [shape: f32[16,32], index: 3, kind: input, shape index: {}]   ;;  %s351_s4 = inlined_call_operand.vmem [shape: f32[1,32], index: 4, kind: input, shape index: {}]   ;;  %s352_s5 = inlined_call_operand.vmem [shape: f32[1,32], index: 5, kind: input, shape index: {}]   ;;  %s353_s6 = inlined_call_operand.hbm [shape: f32[16,32], index: 6, kind: output, shape index: {}]  }
   0x1   :  { %v33_v0 = vld [vmem:[%s348_s1 + $0x38] sm:$0xff]  ;;  %v32_v1 = vld [vmem:[%s348_s1 + $0x30] sm:$0xff]  ;;  %v31_v2 = vld [vmem:[%s348_s1 + $0x28] sm:$0xff] }
   0x2   :  { %205 = vmatprep.subr.mxu0 %v33_v0  ;;  %v24_v3 = vld [vmem:[%s347_s0] sm:$0xff] }
   0x3   :  { %206 = vmatpush3.msra.mxu0 %v33_v0  ;;  %221 = vmatprep.mubr.msk.f32.mxu0 %vm41_vm0, %v24_v3 }
   0x4   :  { %207 = vmatprep.subr.mxu0 %v32_v1 }
   0x5   :  { %11 = vsyncpa [#allocation3], 0  ;;  %208 = vmatpush3.msra.mxu0 %v32_v1  ;;  %v30_v4 = vld [vmem:[%s348_s1 + $0x20] sm:$0xff]  ;;  %v29_v5 = vld [vmem:[%s348_s1 + $0x18] sm:$0xff]  ;;  %vm127_vm1 = vcmask 261120   ;;  %s253_s23 = smov [#allocation2]  }
   0x6   :  { %209 = vmatprep.subr.mxu0 %v31_v2  ;;  %v28_v6 = vld [vmem:[%s348_s1 + $0x10] sm:$0xff]  ;;  %v27_v7 = vld [vmem:[%s348_s1 + $0x8] sm:$0xff]  ;;  %v26_v8 = vld [vmem:[%s348_s1] sm:$0xff]  ;;  %s179_s24 = sshll.u32 %s253_s23, 4  ;;  %s180_s24 = int_to_ptr.vmem [resolvable:$true] %s179_s24 }
   0x7   :  { %210 = vmatpush3.msra.mxu0 %v31_v2  ;;  %v25_v9 = vld [vmem:[%s347_s0 + $0x8] sm:$0xff]  ;;  %v190_v11 = vld [vmem:[%s349_s2] ss:$0 sm:$0xff]  ;;  %s231_s25 = scalar_lea.vmem %s180_s24, 256  ;;  %p236_p1 = scmp.lt.s32.totalorder %s180_s24, %s180_s24 }
   0x8   :  { %211 = vmatprep.subr.mxu0 %v30_v4  ;;  %v123_v13 = vld [vmem:[%s350_s3] sm:$0xff]  ;;  %v124_v16 = vld [vmem:[%s350_s3 + $0x8] sm:$0xff]  ;;  %p232_p0 = scmp.ne.s32.totalorder %s180_s24, %s231_s25  ;;  %p237_p2 = scmp.lt.s32.totalorder %s231_s25, %s231_s25 }
   0x9   :  { %212 = vmatpush3.msra.mxu0 %v30_v4  ;;  %v193_v38 = vld [vmem:[%s351_s4] ss:$0 sm:$0xff] }
   0xa   :  { %213 = vmatprep.subr.mxu0 %v29_v5  ;;  %v194_v40 = vld [vmem:[%s352_s5] ss:$0 sm:$0xff]  ;;  %p238_p3 = por %p237_p2, %p236_p1 }
   0xb   :  { %214 = vmatpush3.msra.mxu0 %v29_v5 }
   0xc   :  { %215 = vmatprep.subr.mxu0 %v28_v6  ;;  %p239_p4 = pnand %p238_p3, %p232_p0 }
   0xd   :  { %216 = vmatpush3.msra.mxu0 %v28_v6 }
   0xe   :  { %217 = vmatprep.subr.mxu0 %v27_v7 }
   0xf   :  { %218 = vmatpush3.msra.mxu0 %v27_v7 }
  0x10   :  { %219 = vmatprep.subr.mxu0 %v26_v8 }
  0x11   :  { %220 = vmatpush3.msra.mxu0 %v26_v8 }
  0x12   :  { %222 = vmatmul.mubr.msk.f32.vlgmr.msra.gmra.mxu0 %vm41_vm0, %v25_v9 }
  0xd2   :  { %v223_v10 = vpop.f32.mrf.mxu0 }
  0xd3   :  { %v120_v14 = vadd.f32 %v223_v10, %v190_v11 }
  0xd4   :  { %v114_v12 = vpop.f32.mrf.mxu0 }
  0xd5   :  { %v115_v15 = vadd.f32 %v190_v11, %v114_v12  ;;  %v126_v19 = vadd.f32 %v124_v16, %v120_v14 }
  0xd7   :  { %v125_v17 = vadd.f32 %v123_v13, %v115_v15  ;;  %v131_v20 = vsel %vm127_vm1, %v126_v19, 0.0 }
  0xd9   :  { %v128_v18 = vsel %vm127_vm1, %v125_v17, 0.0 }
  0xda   :  { %129 = vadd.xlane.f32.xlu0 %v128_v18 }
  0xde   :  { %132 = vadd.xlane.f32.xlu0 %v131_v20 }
 0x163   :  { %v130_v21 = vpop.xlane.xlu0 %129 }
 0x164   :  { %v134_v22 = vmul.f32 0.03125, %v130_v21 }
 0x166   :  { %v136_v23 = vsub.f32 %v125_v17, %v134_v22 }
 0x167   :  { %v133_v24 = vpop.xlane.xlu0 %132 }
 0x168   :  { %v135_v25 = vmul.f32 0.03125, %v133_v24  ;;  %v138_v26 = vmul.f32 %v136_v23, %v136_v23 }
 0x16a   :  { %v137_v27 = vsub.f32 %v126_v19, %v135_v25  ;;  %v140_v28 = vsel %vm127_vm1, %v138_v26, 0.0 }
 0x16b   :  { %141 = vadd.xlane.f32.xlu1 %v140_v28 }
 0x16c   :  { %v139_v29 = vmul.f32 %v137_v27, %v137_v27 }
 0x16e   :  { %v143_v30 = vsel %vm127_vm1, %v139_v29, 0.0 }
 0x16f   :  { %144 = vadd.xlane.f32.xlu1 %v143_v30 }
 0x1f4   :  { %v142_v31 = vpop.xlane.xlu1 %141 }
 0x1f5   :  { %v146_v32 = vmul.f32 0.03125, %v142_v31 }
 0x1f7   :  { %v148_v33 = vadd.f32 1e-12, %v146_v32 }
 0x1f8   :  { %v145_v34 = vpop.xlane.xlu1 %144 }
 0x1f9   :  { %227 = vrsqrt.f32 %v148_v33  ;;  %v147_v35 = vmul.f32 0.03125, %v145_v34 }
 0x1fb   :  { %v149_v36 = vadd.f32 1e-12, %v147_v35 }
 0x1fd   :  { %229 = vrsqrt.f32 %v149_v36 }
 0x206   :  { %v228_v37 = vpop.eup %227 }
 0x207   :  { %v152_v39 = vmul.f32 %v228_v37, %v136_v23 }
 0x209   :  { %v161_v41 = vmul.f32 %v193_v38, %v152_v39 }
 0x20a   :  { %v230_v42 = vpop.eup %229 }
 0x20b   :  { %v153_v43 = vmul.f32 %v230_v42, %v137_v27  ;;  %v170_v44 = vadd.f32 %v194_v40, %v161_v41 }
 0x20d   :  { %v162_v45 = vmul.f32 %v193_v38, %v153_v43  ;;  %172 = vst.msk [vmem:[#allocation2] sm:$0xff] %vm127_vm1, %v170_v44 }
 0x20f   :  { %v171_v46 = vadd.f32 %v194_v40, %v162_v45 }
 0x211   :  { %173 = vst.msk [vmem:[#allocation2 + $0x8] sm:$0xff] %vm127_vm1, %v171_v46 }
 0x212   :  { %242 = shalt.err (!%p239_p4)
}
 0x213   :  { %s254_s4 = smov 128   ;;  %s255_s5 = smov 8  }
 0x214   :  { %185 = dma.vmem_to_hbm [thread:$0]  %s180_s24, 256, %s353_s6, [#allocation3], %s254_s4, %s254_s4, %s255_s5  }
 0x215   :  { %251 = dma.done.wait [#allocation3], 256  }
 0x216   :  { %252 = vsyncadd [#allocation3], 4294967040 }
 0x217   :  { %189 = vsyncpa [#allocation3], 1 }

</bundles_post_ra>
